<compile_context>
chip_gen: v7x
topology: tpu7x:2x2x1
jax: 0.10.0
libtpu: 0.0.40
codegen_flags: <defaults>
</compile_context>

<pallas_src>
import functools

import jax
import jax.numpy as jnp
import numpy as np
from jax.experimental import pallas as pl
from jax.experimental.pallas import tpu as pltpu


def moe_gate_kernel(x_ref, wgt_ref, ids_ref, vals_ref, *, n_experts: int,
                    top_k: int):
    # logits_t: (E_pad, TM), tokens on lanes, experts on sublanes.
    # Contraction over H of (E_pad, H) x (TM, H) -> "A @ B^T" MXU matmul,
    # bf16 operands, f32 accumulation.
    logits_t = jax.lax.dot_general(
        wgt_ref[...], x_ref[...],
        dimension_numbers=(((1,), (1,)), ((), ())),
        preferred_element_type=jnp.float32)

    ep, tm = logits_t.shape
    row_ids = jax.lax.broadcasted_iota(jnp.int32, (ep, tm), 0)
    valid = row_ids < n_experts
    neg_inf = jnp.float32(-jnp.inf)

    # Mask padded expert rows before the softmax so they contribute nothing.
    logits_t = jnp.where(valid, logits_t, neg_inf)

    # Numerically stable softmax pieces over the expert (sublane) axis.
    m = jnp.max(logits_t, axis=0, keepdims=True)          # (1, TM)
    e = jnp.exp(logits_t - m)                             # pad rows -> 0
    s = jnp.sum(e, axis=0, keepdims=True)                 # (1, TM)
    inv_s = pl.reciprocal(s)                               # exact (EUP/VPU)

    # Iterative top-k on the unnormalized exp (same ordering as probs).
    # Padded rows are forced to -inf so they can never be selected.
    p = jnp.where(valid, e, neg_inf)
    ids_rows = []
    vals_rows = []
    for _ in range(top_k):
        v = jnp.max(p, axis=0, keepdims=True)              # (1, TM)
        is_max = p == v
        idx = jnp.min(jnp.where(is_max, row_ids, ep),
                      axis=0, keepdims=True).astype(jnp.int32)  # lowest index
        ids_rows.append(idx)
        vals_rows.append(v)
        p = jnp.where(row_ids == idx, neg_inf, p)

    # Lane-dense (top_k, TM) stores.
    ids_ref[...] = jnp.concatenate(ids_rows, axis=0)
    vals_ref[...] = (jnp.concatenate(vals_rows, axis=0) * inv_s
                     ).astype(vals_ref.dtype)


def moe_gate(x, w_g, top_k, *, token_tile=256, matmul_dtype=jnp.bfloat16):
    """x: (B, S, H), w_g: (H, E). Returns (topk_ids int32, topk_vals x.dtype).

    token_tile must be a multiple of 128 (lane-dense outputs, MXU-friendly);
    256 works well on v6e/v7x, 128 also fine on v5e.  Tokens are zero-padded
    up to a tile multiple; experts are padded up to a multiple of 8.
    """
    B, S, H = x.shape
    E = w_g.shape[1]
    T = B * S
    assert token_tile % 128 == 0, "token_tile must be a multiple of 128"
    assert top_k <= E

    n_tiles = pl.cdiv(T, token_tile)
    T_pad = n_tiles * token_tile
    E_pad = max(8, ((E + 7) // 8) * 8)

    # Token-major x, padded to the tile and cast for the MXU (halves HBM reads).
    xf = x.reshape(T, H)
    if T_pad != T:
        xf = jnp.pad(xf, ((0, T_pad - T), (0, 0)))
    xf = xf.astype(matmul_dtype)

    # W_g transposed to (E_pad, H); padded expert rows are masked in-kernel.
    wgt = w_g.T
    if E_pad != E:
        wgt = jnp.pad(wgt, ((0, E_pad - E), (0, 0)))
    wgt = wgt.astype(matmul_dtype)

    kernel = functools.partial(moe_gate_kernel, n_experts=E, top_k=top_k)

    ids_t, vals_t = pl.pallas_call(
        kernel,
        out_shape=(
            jax.ShapeDtypeStruct((top_k, T_pad), jnp.int32),
            jax.ShapeDtypeStruct((top_k, T_pad), x.dtype),
        ),
        grid=(n_tiles,),
        in_specs=[
            # One token tile of x per step.
            pl.BlockSpec((token_tile, H), lambda i: (i, 0)),
            # W_g: grid-invariant block index -> stays resident in VMEM.
            pl.BlockSpec((E_pad, H), lambda i: (0, 0)),
        ],
        out_specs=(
            pl.BlockSpec((top_k, token_tile), lambda i: (0, i)),
            pl.BlockSpec((top_k, token_tile), lambda i: (0, i)),
        ),
        compiler_params=pltpu.CompilerParams(
            dimension_semantics=("parallel",)),  # lets v7x shard tokens on 2 TCs
    )(xf, wgt)

    # Back to (B, S, top_k); the transpose here is a cheap XLA op.
    ids = ids_t[:, :T].T.reshape(B, S, top_k)
    vals = vals_t[:, :T].T.reshape(B, S, top_k)
    return ids, vals


if __name__ == "__main__":
    # config: d_hidden=32, n_routed_experts=8, n_experts_per_token=2
    B, S, H, E, K = 2, 8, 32, 8, 2

    key = jax.random.PRNGKey(0)
    kx, kw = jax.random.split(key)
    x = jax.random.normal(kx, (B, S, H), dtype=jnp.float32)
    # deterministic synthetic gate weight (module leaves W_g = None)
    w_g = (jax.random.normal(kw, (H, E), dtype=jnp.float32)
           / jnp.sqrt(jnp.float32(H)))

    topk_ids, topk_vals = moe_gate(x, w_g, K)
    jax.block_until_ready((topk_ids, topk_vals))

    # Reference with the same precision policy (bf16 MXU operands, f32 accum).
    logits_ref = jnp.dot(x.reshape(-1, H).astype(jnp.bfloat16),
                         w_g.astype(jnp.bfloat16),
                         preferred_element_type=jnp.float32)
    probs_ref = jax.nn.softmax(logits_ref, axis=-1)
    vals_ref, ids_ref = jax.lax.top_k(probs_ref, K)
    vals_ref = vals_ref.reshape(B, S, K)
    ids_ref = ids_ref.reshape(B, S, K)

    np.testing.assert_allclose(np.asarray(topk_vals), np.asarray(vals_ref),
                               rtol=2e-4, atol=1e-5)
    np.testing.assert_array_equal(np.asarray(topk_ids), np.asarray(ids_ref))

    print("KERNEL_OK")
</pallas_src>

<mosaic_0001>
module attributes {stable_mosaic.version = 11 : i64} {
  func.func @moe_gate_kernel(%arg0: i32, %arg1: memref<256x32xbf16, #tpu.memory_space<vmem>>, %arg2: memref<8x32xbf16, #tpu.memory_space<vmem>>, %arg3: memref<2x256xi32, #tpu.memory_space<vmem>>, %arg4: memref<2x256xf32, #tpu.memory_space<vmem>>) attributes {dimension_semantics = [#tpu.dimension_semantics<parallel>], iteration_bounds = array<i64: 1>, scalar_prefetch = 0 : i64, scratch_operands = 0 : i64, tpu.core_type = #tpu.core_type<tc>, window_params = [{transform_indices = @transform_0, window_bounds = array<i64: 256, 32>}, {pipeline_mode = #tpu.pipeline_mode<synchronous>, transform_indices = @transform_1, window_bounds = array<i64: 8, 32>}, {transform_indices = @transform_2, window_bounds = array<i64: 2, 256>}, {transform_indices = @transform_3, window_bounds = array<i64: 2, 256>}]} {
    %c0 = arith.constant 0 : index
    %c0_0 = arith.constant 0 : index
    %0 = vector.load %arg2[%c0, %c0_0] : memref<8x32xbf16, #tpu.memory_space<vmem>>, vector<8x32xbf16>
    %c0_1 = arith.constant 0 : index
    %c0_2 = arith.constant 0 : index
    %1 = vector.load %arg1[%c0_1, %c0_2] : memref<256x32xbf16, #tpu.memory_space<vmem>>, vector<256x32xbf16>
    %cst = arith.constant dense<0.000000e+00> : vector<8x256xf32>
    %2 = tpu.matmul %0, %1, %cst {dimension_numbers = #tpu.dot_dimension_numbers<[1], [1], [0], [0], [0, 0, 1, 0], [], []>} : vector<8x32xbf16>, vector<256x32xbf16>, vector<8x256xf32> -> vector<8x256xf32>
    %3 = tpu.iota {dimensions = array<i32: 0>} : vector<8x256xi32>
    %c8_i32 = arith.constant 8 : i32
    %4 = vector.broadcast %c8_i32 : i32 to vector<8x256xi32>
    %5 = arith.cmpi slt, %3, %4 : vector<8x256xi32>
    %cst_3 = arith.constant 0xFF800000 : f32
    %6 = vector.broadcast %cst_3 : f32 to vector<8x256xf32>
    %7 = arith.select %5, %2, %6 : vector<8x256xi1>, vector<8x256xf32>
    %cst_4 = arith.constant dense<0xFF800000> : vector<256xf32>
    %8 = vector.multi_reduction <maximumf>, %7, %cst_4 [0] : vector<8x256xf32> to vector<256xf32>
    %9 = vector.shape_cast %8 : vector<256xf32> to vector<1x256xf32>
    %10 = vector.broadcast %9 : vector<1x256xf32> to vector<8x256xf32>
    %11 = arith.subf %7, %10 : vector<8x256xf32>
    %12 = math.exp %11 : vector<8x256xf32>
    %cst_5 = arith.constant dense<0.000000e+00> : vector<256xf32>
    %13 = vector.multi_reduction <add>, %12, %cst_5 [0] : vector<8x256xf32> to vector<256xf32>
    %14 = vector.shape_cast %13 : vector<256xf32> to vector<1x256xf32>
    %15 = tpu.reciprocal %14 : vector<1x256xf32> -> vector<1x256xf32>
    %cst_6 = arith.constant 0xFF800000 : f32
    %16 = vector.broadcast %cst_6 : f32 to vector<8x256xf32>
    %17 = arith.select %5, %12, %16 : vector<8x256xi1>, vector<8x256xf32>
    %cst_7 = arith.constant dense<0xFF800000> : vector<256xf32>
    %18 = vector.multi_reduction <maximumf>, %17, %cst_7 [0] : vector<8x256xf32> to vector<256xf32>
    %19 = vector.shape_cast %18 : vector<256xf32> to vector<1x256xf32>
    %20 = vector.broadcast %19 : vector<1x256xf32> to vector<8x256xf32>
    %21 = arith.cmpf oeq, %17, %20 : vector<8x256xf32>
    %c8_i32_8 = arith.constant 8 : i32
    %22 = vector.broadcast %c8_i32_8 : i32 to vector<8x256xi32>
    %23 = arith.select %21, %3, %22 : vector<8x256xi1>, vector<8x256xi32>
    %cst_9 = arith.constant dense<2147483647> : vector<256xi32>
    %24 = vector.multi_reduction <minsi>, %23, %cst_9 [0] : vector<8x256xi32> to vector<256xi32>
    %25 = vector.shape_cast %24 : vector<256xi32> to vector<1x256xi32>
    %26 = vector.broadcast %25 : vector<1x256xi32> to vector<8x256xi32>
    %27 = arith.cmpi eq, %3, %26 : vector<8x256xi32>
    %cst_10 = arith.constant 0xFF800000 : f32
    %28 = vector.broadcast %cst_10 : f32 to vector<8x256xf32>
    %29 = arith.select %27, %28, %17 : vector<8x256xi1>, vector<8x256xf32>
    %cst_11 = arith.constant dense<0xFF800000> : vector<256xf32>
    %30 = vector.multi_reduction <maximumf>, %29, %cst_11 [0] : vector<8x256xf32> to vector<256xf32>
    %31 = vector.shape_cast %30 : vector<256xf32> to vector<1x256xf32>
    %32 = vector.broadcast %31 : vector<1x256xf32> to vector<8x256xf32>
    %33 = arith.cmpf oeq, %29, %32 : vector<8x256xf32>
    %c8_i32_12 = arith.constant 8 : i32
    %34 = vector.broadcast %c8_i32_12 : i32 to vector<8x256xi32>
    %35 = arith.select %33, %3, %34 : vector<8x256xi1>, vector<8x256xi32>
    %cst_13 = arith.constant dense<2147483647> : vector<256xi32>
    %36 = vector.multi_reduction <minsi>, %35, %cst_13 [0] : vector<8x256xi32> to vector<256xi32>
    %37 = vector.shape_cast %36 : vector<256xi32> to vector<1x256xi32>
    %38 = tpu.concatenate %25, %37 in 0 : vector<1x256xi32>, vector<1x256xi32> -> vector<2x256xi32>
    %c0_14 = arith.constant 0 : index
    %c0_15 = arith.constant 0 : index
    %39 = vector.load %arg3[%c0_14, %c0_15] : memref<2x256xi32, #tpu.memory_space<vmem>>, vector<2x256xi32>
    tpu.vector_store %arg3[%c0_14, %c0_15], %38 {strides = array<i32>} : memref<2x256xi32, #tpu.memory_space<vmem>>, vector<2x256xi32>,
    %40 = tpu.concatenate %19, %31 in 0 : vector<1x256xf32>, vector<1x256xf32> -> vector<2x256xf32>
    %41 = vector.broadcast %15 : vector<1x256xf32> to vector<2x256xf32>
    %42 = arith.mulf %40, %41 : vector<2x256xf32>
    %c0_16 = arith.constant 0 : index
    %c0_17 = arith.constant 0 : index
    %43 = vector.load %arg4[%c0_16, %c0_17] : memref<2x256xf32, #tpu.memory_space<vmem>>, vector<2x256xf32>
    tpu.vector_store %arg4[%c0_16, %c0_17], %42 {strides = array<i32>} : memref<2x256xf32, #tpu.memory_space<vmem>>, vector<2x256xf32>,
    return
  }
  func.func @transform_0(%arg0: i32) -> (i32, i32) {
    %c0_i32 = arith.constant 0 : i32
    %c0_i32_0 = arith.constant 0 : i32
    return %arg0, %c0_i32 : i32, i32
  }
  func.func @transform_1(%arg0: i32) -> (i32, i32) {
    %c0_i32 = arith.constant 0 : i32
    %c0_i32_0 = arith.constant 0 : i32
    %c0_i32_1 = arith.constant 0 : i32
    return %c0_i32, %c0_i32_0 : i32, i32
  }
  func.func @transform_2(%arg0: i32) -> (i32, i32) {
    %c0_i32 = arith.constant 0 : i32
    %c0_i32_0 = arith.constant 0 : i32
    return %c0_i32, %arg0 : i32, i32
  }
  func.func @transform_3(%arg0: i32) -> (i32, i32) {
    %c0_i32 = arith.constant 0 : i32
    %c0_i32_0 = arith.constant 0 : i32
    return %c0_i32, %arg0 : i32, i32
  }
}

</mosaic_0001>

<bundles_post_ra>
// kernel: tpu_custom_call.1
= control target key start
LH: loop header
LB: loop body
LE: loop exit
PB: predicated region body
PF: predicated region fallthrough
CT: control target
= control target key end

     0   :  { %9 = vsyncpa [#allocation3], 0  ;;  %vm129_vm0 = vcmask 261120   ;;  %s643_s0 = inlined_call_operand.vmem [shape: bf16[256,32], index: 0, kind: input, shape index: {}]   ;;  %s644_s1 = inlined_call_operand.vmem [shape: bf16[8,32], index: 1, kind: input, shape index: {}]   ;;  %s645_s2 = inlined_call_operand.hbm [shape: s32[2,256], index: 2, kind: output, shape index: {0}]   ;;  %s646_s3 = inlined_call_operand.hbm [shape: f32[2,256], index: 3, kind: output, shape index: {1}]  }
   0x1   :  { %v436_v0 = vld [vmem:[%s643_s0 + $0x40] sm:$0xff]   ;;  %v438_v2 = vld [vmem:[%s643_s0 + $0x48] sm:$0xff]   ;;  %v440_v6 = vld [vmem:[%s643_s0 + $0x50] sm:$0xff]  }
   0x2   :  { %v437_v1 = vld [vmem:[%s643_s0] sm:$0xff]   ;;  %426 = vmatprep.subr.msk.bf16.mxu0 %vm129_vm0, %v436_v0  ;;  %v439_v4 = vld [vmem:[%s643_s0 + $0x8] sm:$0xff]   ;;  %v441_v7 = vld [vmem:[%s643_s0 + $0x10] sm:$0xff]  }
   0x3   :  { %v134_v3 = vsel %vm129_vm0, %v437_v1, 0  ;;  %v137_v5 = vsel %vm129_vm0, %v439_v4, 0  ;;  %v16_v8 = vld [vmem:[%s644_s1] sm:$0xf] }
   0x4   :  { %409 = vmatpush3.bf16.xpose.msra.mxu0 %v134_v3 }
   0x5   :  { %427 = vmatprep.subr.msk.bf16.mxu0 %vm129_vm0, %v438_v2 }
   0xc   :  { %411 = vmatpush3.bf16.xpose.msra.mxu0 %v137_v5 }
   0xd   :  { %428 = vmatprep.subr.msk.bf16.mxu0 %vm129_vm0, %v440_v6 }
   0xe   :  { %10 = vsyncpa [#allocation5], 0  ;;  %v140_v9 = vsel %vm129_vm0, %v441_v7, 0  ;;  %v442_v10 = vld [vmem:[%s643_s0 + $0x58] sm:$0xff]   ;;  %424 = vmatprep.mubr.msk.bf16.mxu0 %vm129_vm0, %v16_v8  ;;  %v444_v13 = vld [vmem:[%s643_s0 + $0x60] sm:$0xff]   ;;  %v222_v52 = vlaneseq  ;;  %vm333_vm11 = vcmask 1040384  }
   0xf   :  { %v443_v11 = vld [vmem:[%s643_s0 + $0x18] sm:$0xff]   ;;  %v445_v14 = vld [vmem:[%s643_s0 + $0x20] sm:$0xff]   ;;  %v446_v16 = vld [vmem:[%s643_s0 + $0x68] sm:$0xff]  }
  0x10   :  { %v143_v12 = vsel %vm129_vm0, %v443_v11, 0  ;;  %v146_v15 = vsel %vm129_vm0, %v445_v14, 0  ;;  %v447_v17 = vld [vmem:[%s643_s0 + $0x28] sm:$0xff]   ;;  %v448_v19 = vld [vmem:[%s643_s0 + $0x70] sm:$0xff]   ;;  %v450_v22 = vld [vmem:[%s643_s0 + $0x78] sm:$0xff]   ;;  %v599_v57 = vshrl.u32 %v222_v52, 7 }
  0x11   :  { %v149_v18 = vsel %vm129_vm0, %v447_v17, 0  ;;  %v449_v20 = vld [vmem:[%s643_s0 + $0x30] sm:$0xff]   ;;  %v451_v23 = vld [vmem:[%s643_s0 + $0x38] sm:$0xff]   ;;  %s508_s0 = smov [#allocation4]  }
  0x12   :  { %v152_v21 = vsel %vm129_vm0, %v449_v20, 0  ;;  %v155_v24 = vsel %vm129_vm0, %v451_v23, 0  ;;  %s377_s18 = sshll.u32 %s508_s0, 4  ;;  %s378_s18 = int_to_ptr.vmem [resolvable:$true] %s377_s18 }
  0x13   :  { %s460_s19 = scalar_lea.vmem %s378_s18, 64  ;;  %p465_p1 = scmp.lt.s32.totalorder %s378_s18, %s378_s18 }
  0x14   :  { %413 = vmatpush3.bf16.xpose.msra.mxu0 %v140_v9  ;;  %p461_p0 = scmp.ne.s32.totalorder %s378_s18, %s460_s19  ;;  %p466_p2 = scmp.lt.s32.totalorder %s460_s19, %s460_s19 }
  0x15   :  { %429 = vmatprep.subr.msk.bf16.mxu0 %vm129_vm0, %v442_v10 }
  0x16   :  { %p467_p3 = por %p466_p2, %p465_p1 }
  0x18   :  { %p468_p4 = pnand %p467_p3, %p461_p0 }
  0x1c   :  { %415 = vmatpush3.bf16.xpose.msra.mxu0 %v143_v12 }
  0x1d   :  { %430 = vmatprep.subr.msk.bf16.mxu0 %vm129_vm0, %v444_v13 }
  0x24   :  { %417 = vmatpush3.bf16.xpose.msra.mxu0 %v146_v15 }
  0x25   :  { %431 = vmatprep.subr.msk.bf16.mxu0 %vm129_vm0, %v446_v16 }
  0x2c   :  { %419 = vmatpush3.bf16.xpose.msra.mxu0 %v149_v18 }
  0x2d   :  { %432 = vmatprep.subr.msk.bf16.mxu0 %vm129_vm0, %v448_v19 }
  0x34   :  { %421 = vmatpush3.bf16.xpose.msra.mxu0 %v152_v21 }
  0x35   :  { %433 = vmatprep.subr.msk.bf16.mxu0 %vm129_vm0, %v450_v22 }
  0x3c   :  { %423 = vmatpush3.bf16.xpose.msra.mxu0 %v155_v24 }
  0x43   :  { %425 = vmatmul.mubr.msk.bf16.vlgmr.msra.gmra.mrb[0].mxu0 %vm129_vm0, %v16_v8 }
 0x116   :  { %v215_v25 = vpop.f32.mrb[0].mxu0 }
 0x117   :  { %v227_v26 = vrot.slane %v215_v25, 4  ;;  %v217_v27 = vpop.f32.mrb[1].mxu0 }
 0x118   :  { %v233_v28 = vrot.slane %v217_v27, 4  ;;  %v219_v29 = vpop.f32.mrb[2].mxu0 }
 0x119   :  { %v228_v30 = vmax.f32 %v215_v25, %v227_v26  ;;  %v220_v31 = vpop.f32.mrb[3].mxu0 }
 0x11a   :  { %v234_v32 = vmax.f32 %v217_v27, %v233_v28 }
 0x11b   :  { %v229_v33 = vrot.slane %v228_v30, 2 }
 0x11c   :  { %v235_v34 = vrot.slane %v234_v32, 2 }
 0x11d   :  { %v230_v35 = vmax.f32 %v228_v30, %v229_v33 }
 0x11e   :  { %v236_v36 = vmax.f32 %v234_v32, %v235_v34 }
 0x11f   :  { %v231_v37 = vrot.slane %v230_v35, 1 }
 0x120   :  { %v237_v38 = vrot.slane %v236_v36, 1 }
 0x121   :  { %v232_v39 = vmax.f32 %v230_v35, %v231_v37 }
 0x122   :  { %v238_v40 = vmax.f32 %v236_v36, %v237_v38 }
 0x123   :  { %v239_v41 = vsub.f32 %v215_v25, %v232_v39 }
 0x124   :  { %v240_v42 = vsub.f32 %v217_v27, %v238_v40 }
 0x125   :  { %v241_v43 = vmul.f32 1.442695, %v239_v41 }
 0x126   :  { %v243_v44 = vmul.f32 1.442695, %v240_v42 }
 0x127   :  { %452 = vpow2.f32 %v241_v43 }
 0x128   :  { %454 = vpow2.f32 %v243_v44 }
 0x131   :  { %v453_v45 = vpop.eup %452 }
 0x132   :  { %v455_v46 = vpop.eup %454  ;;  %v245_v47 = vrot.slane %v453_v45, 4 }
 0x133   :  { %v251_v48 = vrot.slane %v455_v46, 4 }
 0x134   :  { %v262_v49 = vmax.f32 %v453_v45, %v245_v47  ;;  %v246_v60 = vadd.f32 %v453_v45, %v245_v47 }
 0x135   :  { %v268_v50 = vmax.f32 %v455_v46, %v251_v48  ;;  %v252_v62 = vadd.f32 %v455_v46, %v251_v48 }
 0x136   :  { %v263_v51 = vrot.slane %v262_v49, 2  ;;  %v247_v2 = vrot.slane %v246_v60, 2 }
 0x137   :  { %v269_v53 = vrot.slane %v268_v50, 2  ;;  %v253_v4 = vrot.slane %v252_v62, 2 }
 0x138   :  { %v264_v54 = vmax.f32 %v262_v49, %v263_v51  ;;  %v248_v8 = vadd.f32 %v247_v2, %v246_v60 }
 0x139   :  { %v270_v55 = vmax.f32 %v268_v50, %v269_v53  ;;  %v254_v10 = vadd.f32 %v253_v4, %v252_v62 }
 0x13a   :  { %v265_v56 = vrot.slane %v264_v54, 1  ;;  %v249_v14 = vrot.slane %v248_v8, 1 }
 0x13b   :  { %v271_v58 = vrot.slane %v270_v55, 1  ;;  %v255_v16 = vrot.slane %v254_v10, 1 }
 0x13c   :  { %v266_v59 = vmax.f32 %v264_v54, %v265_v56  ;;  %v250_v19 = vadd.f32 %v249_v14, %v248_v8 }
 0x13d   :  { %v272_v61 = vmax.f32 %v270_v55, %v271_v58  ;;  %v256_v21 = vadd.f32 %v255_v16, %v254_v10 }
 0x13e   :  { %vm273_vm1 = vcmp.eq.f32.partialorder %v453_v45, %v266_v59  ;;  %456 = vrcp.f32 %v250_v19 }
 0x13f   :  { %vm274_vm2 = vcmp.eq.f32.partialorder %v455_v46, %v272_v61  ;;  %v275_v63 = vsel %vm273_vm1, %v599_v57, 8  ;;  %458 = vrcp.f32 %v256_v21 }
 0x140   :  { %v276_v0 = vsel %vm274_vm2, %v599_v57, 8  ;;  %v277_v1 = vrot.slane %v275_v63, 4 }
 0x141   :  { %v286_v3 = vrot.slane %v276_v0, 4 }
 0x142   :  { %vm278_vm3 = vcmp.lt.s32.totalorder %v275_v63, %v277_v1 }
 0x143   :  { %v279_v5 = vsel %vm278_vm3, %v275_v63, %v277_v1  ;;  %vm287_vm4 = vcmp.lt.s32.totalorder %v276_v0, %v286_v3 }
 0x144   :  { %v280_v6 = vrot.slane %v279_v5, 2  ;;  %v288_v7 = vsel %vm287_vm4, %v276_v0, %v286_v3 }
 0x145   :  { %v289_v9 = vrot.slane %v288_v7, 2 }
 0x146   :  { %vm281_vm5 = vcmp.lt.s32.totalorder %v279_v5, %v280_v6 }
 0x147   :  { %v282_v11 = vsel %vm281_vm5, %v279_v5, %v280_v6  ;;  %vm290_vm6 = vcmp.lt.s32.totalorder %v288_v7, %v289_v9 }
 0x148   :  { %v283_v12 = vrot.slane %v282_v11, 1  ;;  %v291_v13 = vsel %vm290_vm6, %v288_v7, %v289_v9  ;;  %v457_v35 = vpop.eup %456 }
 0x149   :  { %v292_v15 = vrot.slane %v291_v13, 1  ;;  %v459_v37 = vpop.eup %458 }
 0x14a   :  { %vm284_vm7 = vcmp.lt.s32.totalorder %v282_v11, %v283_v12 }
 0x14b   :  { %v603_v17 = vsel %vm284_vm7, %v282_v11, %v283_v12  ;;  %vm293_vm8 = vcmp.lt.s32.totalorder %v291_v13, %v292_v15 }
 0x14c   :  { %v605_v18 = vsel %vm293_vm8, %v291_v13, %v292_v15  ;;  %vm295_vm9 = vcmp.eq.s32.totalorder %v599_v57, %v603_v17 }
 0x14d   :  { %vm296_vm10 = vcmp.eq.s32.totalorder %v599_v57, %v605_v18  ;;  %v297_v20 = vsel %vm295_vm9, -inf, %v453_v45 }
 0x14e   :  { %v298_v22 = vsel %vm296_vm10, -inf, %v455_v46  ;;  %v299_v23 = vrot.slane %v297_v20, 4 }
 0x14f   :  { %v305_v24 = vrot.slane %v298_v22, 4 }
 0x150   :  { %v300_v25 = vmax.f32 %v297_v20, %v299_v23 }
 0x151   :  { %v306_v26 = vmax.f32 %v298_v22, %v305_v24 }
 0x152   :  { %v301_v27 = vrot.slane %v300_v25, 2 }
 0x153   :  { %v307_v28 = vrot.slane %v306_v26, 2 }
 0x154   :  { %v302_v29 = vmax.f32 %v300_v25, %v301_v27 }
 0x155   :  { %v308_v30 = vmax.f32 %v306_v26, %v307_v28 }
 0x156   :  { %v303_v31 = vrot.slane %v302_v29, 1 }
 0x157   :  { %v309_v32 = vrot.slane %v308_v30, 1 }
 0x158   :  { %v304_v33 = vmax.f32 %v302_v29, %v303_v31 }
 0x159   :  { %v310_v34 = vmax.f32 %v308_v30, %v309_v32 }
 0x15a   :  { %vm311_vm12 = vcmp.eq.f32.partialorder %v297_v20, %v304_v33  ;;  %v345_v36 = vsel %vm333_vm11, %v266_v59, %v304_v33 }
 0x15b   :  { %vm312_vm13 = vcmp.eq.f32.partialorder %v298_v22, %v310_v34  ;;  %v313_v38 = vsel %vm311_vm12, %v599_v57, 8  ;;  %v346_v39 = vsel %vm333_vm11, %v272_v61, %v310_v34  ;;  %v347_v40 = vmul.f32 %v457_v35, %v345_v36 }
 0x15c   :  { %v314_v41 = vsel %vm312_vm13, %v599_v57, 8  ;;  %v315_v42 = vrot.slane %v313_v38, 4  ;;  %v348_v43 = vmul.f32 %v459_v37, %v346_v39 }
 0x15d   :  { %v324_v44 = vrot.slane %v314_v41, 4 }
 0x15e   :  { %vm316_vm14 = vcmp.lt.s32.totalorder %v313_v38, %v315_v42  ;;  %v351_v45 = vcombine.low %v347_v40, %v348_v43 }
 0x15f   :  { %v317_v46 = vsel %vm316_vm14, %v313_v38, %v315_v42  ;;  %vm325_vm15 = vcmp.lt.s32.totalorder %v314_v41, %v324_v44 }
 0x160   :  { %v318_v47 = vrot.slane %v317_v46, 2  ;;  %v326_v48 = vsel %vm325_vm15, %v314_v41, %v324_v44  ;;  %407 = vst.sshfl [vmem:[#allocation4] sm:$0x33 pattern:$0x76325410] %v351_v45 }
 0x161   :  { %v327_v49 = vrot.slane %v326_v48, 2 }
 0x162   :  { %471 = shalt.err (!%p468_p4)
}
 0x163   :  { %s472_s22 = scalar_lea.hbm %s646_s3, 64 }
 0x164   :  { %p473_p5 = scmp.ne.s32.totalorder %s646_s3, %s472_s22  ;;  %p476_p6 = scmp.lt.u32.totalorder %s472_s22, %s646_s3 }
 0x166   :  { %p478_p7 = pnand %p476_p6, %p473_p5 }
 0x168   :  { %481 = shalt.err (!%p478_p7)
}
 0x169   :  { %380 = dma.vmem_to_hbm [thread:$0]  %s378_s18, 64, %s646_s3, [#allocation5]   ;;  %vm319_vm0 = vcmp.lt.s32.totalorder %v317_v46, %v318_v47  ;;  %vm328_vm1 = vcmp.lt.s32.totalorder %v326_v48, %v327_v49 }
 0x16a   :  { %v320_v50 = vsel %vm319_vm0, %v317_v46, %v318_v47  ;;  %v329_v52 = vsel %vm328_vm1, %v326_v48, %v327_v49  ;;  %s509_s29 = smov [#allocation2]  }
 0x16b   :  { %v321_v51 = vrot.slane %v320_v50, 1  ;;  %v330_v53 = vrot.slane %v329_v52, 1  ;;  %s367_s30 = sshll.u32 %s509_s29, 4  ;;  %s368_s30 = int_to_ptr.vmem [resolvable:$true] %s367_s30 }
 0x16c   :  { %s482_s3 = scalar_lea.vmem %s368_s30, 64  ;;  %p487_p9 = scmp.lt.s32.totalorder %s368_s30, %s368_s30 }
 0x16d   :  { %vm322_vm2 = vcmp.lt.s32.totalorder %v320_v50, %v321_v51  ;;  %vm331_vm3 = vcmp.lt.s32.totalorder %v329_v52, %v330_v53  ;;  %p483_p8 = scmp.ne.s32.totalorder %s368_s30, %s482_s3  ;;  %p488_p10 = scmp.lt.s32.totalorder %s482_s3, %s482_s3 }
 0x16e   :  { %v323_v54 = vsel %vm322_vm2, %v320_v50, %v321_v51  ;;  %v332_v55 = vsel %vm331_vm3, %v329_v52, %v330_v53 }
 0x16f   :  { %v334_v56 = vsel %vm333_vm11, %v603_v17, %v323_v54  ;;  %v335_v57 = vsel %vm333_vm11, %v605_v18, %v332_v55  ;;  %p489_p11 = por %p488_p10, %p487_p9 }
 0x170   :  { %v336_v58 = vcombine.low %v334_v56, %v335_v57 }
 0x171   :  { %p490_p12 = pnand %p489_p11, %p483_p8 }
 0x172   :  { %406 = vst.sshfl [vmem:[#allocation2] sm:$0x33 pattern:$0x76325410] %v336_v58 }
 0x173   :  { %493 = shalt.err (!%p490_p12)
}
 0x174   :  { %s494_s5 = scalar_lea.hbm %s645_s2, 64 }
 0x175   :  { %p495_p13 = scmp.ne.s32.totalorder %s645_s2, %s494_s5  ;;  %p498_p0 = scmp.lt.u32.totalorder %s494_s5, %s645_s2 }
 0x177   :  { %p500_p1 = pnand %p498_p0, %p495_p13 }
 0x179   :  { %503 = shalt.err (!%p500_p1)
}
 0x17a   :  { %370 = dma.vmem_to_hbm [thread:$0]  %s368_s30, 64, %s645_s2, [#allocation3]  }
 0x17b   :  { %504 = dma.done.wait [#allocation3], 64  }
 0x17c   :  { %505 = vsyncadd [#allocation3], 4294967232 }
 0x17d   :  { %506 = dma.done.wait [#allocation5], 64  }
 0x17e   :  { %507 = vsyncadd [#allocation5], 4294967232 }
 0x17f   :  { %387 = vsyncpa [#allocation3], 1 }
 0x180   :  { %388 = vsyncpa [#allocation5], 1 }

</bundles_post_ra>
